<compile_context>
chip_gen: v7x
topology: tpu7x:2x2x1
jax: 0.10.0
libtpu: 0.0.40
codegen_flags: <defaults>
</compile_context>

<pallas_src>
import jax
import jax.numpy as jnp
from jax.experimental import pallas as pl
from jax.experimental.pallas import tpu as pltpu

S = 7               # grid_size
B = 2               # num_bboxes
C = 20              # num_classes
D = B * 5 + C       # 30 channels per cell
D_PAD = 32          # sublane-friendly channel pad
MAX_BLOCK_ROWS = 64  # 64 rows x 128 lanes = 8192 cells per grid step


def _yolo_loss_kernel(p_ref, t_ref, o_ref, acc_ref):
    """p_ref/t_ref: (D_PAD, BR, 128) VMEM channel planes.
       o_ref: (5,) f32 SMEM.  acc_ref: (5, BR, 128) f32 VMEM accumulator."""
    step = pl.program_id(0)
    nsteps = pl.num_programs(0)

    @pl.when(step == 0)
    def _init():
        acc_ref[...] = jnp.zeros_like(acc_ref)

    cell = jnp.float32(1.0 / S)

    def to_ltrb(x, y, w, h):
        cx = x * cell
        cy = y * cell
        return cx - 0.5 * w, cy - 0.5 * h, cx + 0.5 * w, cy + 0.5 * h

    def iou(a, b):
        ax1, ay1, ax2, ay2 = a
        bx1, by1, bx2, by2 = b
        ix1 = jnp.maximum(ax1, bx1)
        iy1 = jnp.maximum(ay1, by1)
        ix2 = jnp.minimum(ax2, bx2)
        iy2 = jnp.minimum(ay2, by2)
        iw = jnp.maximum(ix2 - ix1, 0.0)
        ih = jnp.maximum(iy2 - iy1, 0.0)
        inter = iw * ih
        area_a = (ax2 - ax1) * (ay2 - ay1)
        area_b = (bx2 - bx1) * (by2 - by1)
        union = area_a + area_b - inter
        # TODO(synk): torch yields nan/inf for zero-area unions; guarded here so
        # zero-padded lanes stay finite (identical for non-degenerate boxes).
        return jnp.where(union > 0.0, inter / union, 0.0)

    # Channel planes, each (BR, 128) and fully sublane/lane dense.
    px0, py0, pw0, ph0, pc0 = p_ref[0], p_ref[1], p_ref[2], p_ref[3], p_ref[4]
    px1, py1, pw1, ph1, pc1 = p_ref[5], p_ref[6], p_ref[7], p_ref[8], p_ref[9]
    tx0, ty0, tw0, th0, tc0 = t_ref[0], t_ref[1], t_ref[2], t_ref[3], t_ref[4]
    tx1, ty1, tw1, th1, tc1 = t_ref[5], t_ref[6], t_ref[7], t_ref[8], t_ref[9]

    # torch compares IoU of every pred box against target box 0 of the cell.
    t_box0 = to_ltrb(tx0, ty0, tw0, th0)
    iou0 = iou(to_ltrb(px0, py0, pw0, ph0), t_box0)
    iou1 = iou(to_ltrb(px1, py1, pw1, ph1), t_box0)

    # torch.max(dim=0) returns the first maximal index -> box 0 wins ties.
    resp1 = iou1 > iou0
    resp_iou = jnp.where(resp1, iou1, iou0)

    def sel(a0, a1):
        return jnp.where(resp1, a1, a0)

    pr_x, pr_y = sel(px0, px1), sel(py0, py1)
    pr_w, pr_h = sel(pw0, pw1), sel(ph0, ph1)
    pr_c = sel(pc0, pc1)
    tr_x, tr_y = sel(tx0, tx1), sel(ty0, ty1)
    tr_w, tr_h = sel(tw0, tw1), sel(th0, th1)

    obj = tc0 == 1.0
    noobj = tc0 == 0.0          # zero-padded lanes land here but contribute 0
    zero = jnp.zeros_like(pr_x)

    xy_c = jnp.where(obj, (tr_x - pr_x) ** 2 + (tr_y - pr_y) ** 2, zero)
    # (sqrt(a)-sqrt(b))^2 == a + b - 2*sqrt(a*b) for a, b >= 0  -> 2 sqrts.
    wh_c = jnp.where(
        obj,
        (tr_w + pr_w - 2.0 * jnp.sqrt(tr_w * pr_w))
        + (tr_h + pr_h - 2.0 * jnp.sqrt(tr_h * pr_h)),
        zero)
    obj_c = jnp.where(obj, (resp_iou - pr_c) ** 2, zero)
    noobj_c = jnp.where(noobj, (tc0 - pc0) ** 2 + (tc1 - pc1) ** 2, zero)

    cls_c = zero
    for ci in range(B * 5, D):          # unrolled dense VPU adds, no XLU reduce
        dci = t_ref[ci] - p_ref[ci]
        cls_c = cls_c + dci * dci
    cls_c = jnp.where(obj, cls_c, zero)

    # Pure per-lane accumulation each step; cross-lane reduction deferred.
    acc_ref[0] = acc_ref[0] + xy_c
    acc_ref[1] = acc_ref[1] + wh_c
    acc_ref[2] = acc_ref[2] + obj_c
    acc_ref[3] = acc_ref[3] + noobj_c
    acc_ref[4] = acc_ref[4] + cls_c

    @pl.when(step == nsteps - 1)
    def _finalize():
        o_ref[0] = jnp.sum(acc_ref[0])
        o_ref[1] = jnp.sum(acc_ref[1])
        o_ref[2] = jnp.sum(acc_ref[2])
        o_ref[3] = jnp.sum(acc_ref[3])
        o_ref[4] = jnp.sum(acc_ref[4])


@jax.jit
def yolo_loss_pallas(pred_tensor, target_tensor):
    """pred/target: [batch, S, S, B*5+C] float32 -> 5 scalar losses."""
    batch = pred_tensor.shape[0]
    n = batch * S * S
    rows = -(-n // 128)                                       # 128-lane rows
    block_rows = min(MAX_BLOCK_ROWS, ((rows + 7) // 8) * 8)   # multiple of 8
    rows_pad = ((rows + block_rows - 1) // block_rows) * block_rows
    n_pad = rows_pad * 128

    def prep(x):
        x = x.reshape(n, D).astype(jnp.float32).T             # (30, n) channel-major
        x = jnp.pad(x, ((0, D_PAD - D), (0, n_pad - n)))      # (32, n_pad)
        return x.reshape(D_PAD, rows_pad, 128)                # channel planes

    p = prep(pred_tensor)
    t = prep(target_tensor)

    sums = pl.pallas_call(
        _yolo_loss_kernel,
        out_shape=jax.ShapeDtypeStruct((5,), jnp.float32),
        grid_spec=pltpu.PrefetchScalarGridSpec(
            num_scalar_prefetch=0,
            grid=(rows_pad // block_rows,),
            in_specs=[
                pl.BlockSpec((D_PAD, block_rows, 128), lambda i: (0, i, 0)),
                pl.BlockSpec((D_PAD, block_rows, 128), lambda i: (0, i, 0)),
            ],
            out_specs=pl.BlockSpec(memory_space=pltpu.MemorySpace.SMEM),
            scratch_shapes=[pltpu.VMEM((5, block_rows, 128), jnp.float32)],
        ),
        # TODO(synk): on v7x a leading size-2 "parallel" grid axis with a
        # per-core (2, 5) output would use both TensorCores; kept single-core
        # here for portability/simplicity.
        compiler_params=pltpu.CompilerParams(
            dimension_semantics=("arbitrary",)),
    )(p, t)

    losses = sums / jnp.float32(batch)
    return losses[0], losses[1], losses[2], losses[3], losses[4]


def yolo_loss_ref(pred_tensor, target_tensor):
    """Pure-JAX reference (vectorized transcription of the torch forward)."""
    batch = pred_tensor.shape[0]
    p = pred_tensor.reshape(-1, D).astype(jnp.float32)
    t = target_tensor.reshape(-1, D).astype(jnp.float32)
    cell = 1.0 / S

    def ltrb(b):
        xy = b[:, :2] * cell
        wh = b[:, 2:4]
        return jnp.concatenate([xy - 0.5 * wh, xy + 0.5 * wh], -1)

    def iou(a, b):
        lt = jnp.maximum(a[:, :2], b[:, :2])
        rb = jnp.minimum(a[:, 2:4], b[:, 2:4])
        wh = jnp.maximum(rb - lt, 0.0)
        inter = wh[:, 0] * wh[:, 1]
        area_a = (a[:, 2] - a[:, 0]) * (a[:, 3] - a[:, 1])
        area_b = (b[:, 2] - b[:, 0]) * (b[:, 3] - b[:, 1])
        union = area_a + area_b - inter
        return jnp.where(union > 0.0, inter / union, 0.0)

    iou0 = iou(ltrb(p[:, 0:5]), ltrb(t[:, 0:5]))
    iou1 = iou(ltrb(p[:, 5:10]), ltrb(t[:, 0:5]))
    resp1 = iou1 > iou0
    resp_iou = jnp.where(resp1, iou1, iou0)
    pr = jnp.where(resp1[:, None], p[:, 5:10], p[:, 0:5])
    tr = jnp.where(resp1[:, None], t[:, 5:10], t[:, 0:5])
    obj = t[:, 4] == 1.0
    noobj = t[:, 4] == 0.0

    loss_xy = jnp.sum(jnp.where(obj, jnp.sum((tr[:, :2] - pr[:, :2]) ** 2, -1), 0.0)) / batch
    loss_wh = jnp.sum(jnp.where(
        obj, jnp.sum((jnp.sqrt(tr[:, 2:4]) - jnp.sqrt(pr[:, 2:4])) ** 2, -1), 0.0)) / batch
    loss_obj = jnp.sum(jnp.where(obj, (resp_iou - pr[:, 4]) ** 2, 0.0)) / batch
    loss_noobj = jnp.sum(jnp.where(
        noobj, (t[:, 4] - p[:, 4]) ** 2 + (t[:, 9] - p[:, 9]) ** 2, 0.0)) / batch
    loss_class = jnp.sum(jnp.where(
        obj, jnp.sum((t[:, B * 5:] - p[:, B * 5:]) ** 2, -1), 0.0)) / batch
    return loss_xy, loss_wh, loss_obj, loss_noobj, loss_class


def _make_inputs(batch, key):
    k1, k2, k3, k4, k5 = jax.random.split(key, 5)
    # predictions: positive values so sqrt(w), sqrt(h) are finite (as in YOLO).
    pred = jax.random.uniform(k1, (batch, S, S, D), jnp.float32, 0.05, 0.95)
    # targets: conf channels exactly 0/1, both target boxes identical per cell,
    # one-hot classes (standard YOLO-v1 target encoding).
    obj_mask = jax.random.uniform(k2, (batch, S, S)) < 0.3
    xy = jax.random.uniform(k3, (batch, S, S, 2), jnp.float32, 0.05, 0.95)
    wh = jax.random.uniform(k4, (batch, S, S, 2), jnp.float32, 0.10, 0.80)
    cls_idx = jax.random.randint(k5, (batch, S, S), 0, C)
    cls_onehot = jax.nn.one_hot(cls_idx, C, dtype=jnp.float32)
    conf = jnp.ones((batch, S, S, 1), jnp.float32)
    box = jnp.concatenate([xy, wh, conf], axis=-1)
    target_full = jnp.concatenate([box, box, cls_onehot], axis=-1)
    target = jnp.where(obj_mask[..., None], target_full, 0.0)
    return pred, target


if __name__ == "__main__":
    key = jax.random.PRNGKey(0)

    # Small shape (single grid step).
    pred, target = _make_inputs(2, key)
    out = jax.block_until_ready(yolo_loss_pallas(pred, target))
    ref = yolo_loss_ref(pred, target)
    for a, b in zip(out, ref):
        assert jnp.allclose(a, b, rtol=1e-4, atol=1e-4), (a, b)

    # Larger shape to exercise the multi-step accumulator path (grid > 1).
    pred2, target2 = _make_inputs(192, jax.random.PRNGKey(1))
    out2 = jax.block_until_ready(yolo_loss_pallas(pred2, target2))
    ref2 = yolo_loss_ref(pred2, target2)
    for a, b in zip(out2, ref2):
        assert jnp.allclose(a, b, rtol=1e-4, atol=1e-3), (a, b)

    print("KERNEL_OK")
</pallas_src>

<mosaic_0001>
module attributes {stable_mosaic.version = 11 : i64} {
  func.func @_yolo_loss_kernel(%arg0: i32, %arg1: memref<32x8x128xf32, #tpu.memory_space<vmem>>, %arg2: memref<32x8x128xf32, #tpu.memory_space<vmem>>, %arg3: memref<5xf32, #tpu.memory_space<smem>>, %arg4: memref<5x8x128xf32, #tpu.memory_space<vmem>>) attributes {dimension_semantics = [#tpu.dimension_semantics<arbitrary>], iteration_bounds = array<i64: 1>, scalar_prefetch = 0 : i64, scratch_operands = 1 : i64, tpu.core_type = #tpu.core_type<tc>, window_params = [{transform_indices = @transform_0, window_bounds = array<i64: 32, 8, 128>}, {transform_indices = @transform_1, window_bounds = array<i64: 32, 8, 128>}, {transform_indices = @transform_2, window_bounds = array<i64: 5>}]} {
    %c0_i32 = arith.constant 0 : i32
    %0 = arith.cmpi eq, %arg0, %c0_i32 : i32
    %1 = arith.extui %0 : i1 to i32
    %c0_i32_0 = arith.constant 0 : i32
    %2 = arith.cmpi ne, %1, %c0_i32_0 : i32
    scf.if %2 {
      %cst_213 = arith.constant 0.000000e+00 : f32
      %358 = vector.broadcast %cst_213 : f32 to vector<5x8x128xf32>
      %c0_214 = arith.constant 0 : index
      %c0_215 = arith.constant 0 : index
      %c0_216 = arith.constant 0 : index
      %359 = vector.load %arg4[%c0_214, %c0_215, %c0_216] : memref<5x8x128xf32, #tpu.memory_space<vmem>>, vector<5x8x128xf32>
      tpu.vector_store %arg4[%c0_214, %c0_215, %c0_216], %358 {strides = array<i32>} : memref<5x8x128xf32, #tpu.memory_space<vmem>>, vector<5x8x128xf32>,
    } else {
    }
    %c0 = arith.constant 0 : index
    %c0_1 = arith.constant 0 : index
    %c0_2 = arith.constant 0 : index
    %3 = vector.load %arg1[%c0, %c0_1, %c0_2] : memref<32x8x128xf32, #tpu.memory_space<vmem>>, vector<1x8x128xf32>
    %4 = vector.shape_cast %3 : vector<1x8x128xf32> to vector<8x128xf32>
    %c1 = arith.constant 1 : index
    %c0_3 = arith.constant 0 : index
    %c0_4 = arith.constant 0 : index
    %5 = vector.load %arg1[%c1, %c0_3, %c0_4] : memref<32x8x128xf32, #tpu.memory_space<vmem>>, vector<1x8x128xf32>
    %6 = vector.shape_cast %5 : vector<1x8x128xf32> to vector<8x128xf32>
    %c2 = arith.constant 2 : index
    %c0_5 = arith.constant 0 : index
    %c0_6 = arith.constant 0 : index
    %7 = vector.load %arg1[%c2, %c0_5, %c0_6] : memref<32x8x128xf32, #tpu.memory_space<vmem>>, vector<1x8x128xf32>
    %8 = vector.shape_cast %7 : vector<1x8x128xf32> to vector<8x128xf32>
    %c3 = arith.constant 3 : index
    %c0_7 = arith.constant 0 : index
    %c0_8 = arith.constant 0 : index
    %9 = vector.load %arg1[%c3, %c0_7, %c0_8] : memref<32x8x128xf32, #tpu.memory_space<vmem>>, vector<1x8x128xf32>
    %10 = vector.shape_cast %9 : vector<1x8x128xf32> to vector<8x128xf32>
    %c4 = arith.constant 4 : index
    %c0_9 = arith.constant 0 : index
    %c0_10 = arith.constant 0 : index
    %11 = vector.load %arg1[%c4, %c0_9, %c0_10] : memref<32x8x128xf32, #tpu.memory_space<vmem>>, vector<1x8x128xf32>
    %12 = vector.shape_cast %11 : vector<1x8x128xf32> to vector<8x128xf32>
    %c5 = arith.constant 5 : index
    %c0_11 = arith.constant 0 : index
    %c0_12 = arith.constant 0 : index
    %13 = vector.load %arg1[%c5, %c0_11, %c0_12] : memref<32x8x128xf32, #tpu.memory_space<vmem>>, vector<1x8x128xf32>
    %14 = vector.shape_cast %13 : vector<1x8x128xf32> to vector<8x128xf32>
    %c6 = arith.constant 6 : index
    %c0_13 = arith.constant 0 : index
    %c0_14 = arith.constant 0 : index
    %15 = vector.load %arg1[%c6, %c0_13, %c0_14] : memref<32x8x128xf32, #tpu.memory_space<vmem>>, vector<1x8x128xf32>
    %16 = vector.shape_cast %15 : vector<1x8x128xf32> to vector<8x128xf32>
    %c7 = arith.constant 7 : index
    %c0_15 = arith.constant 0 : index
    %c0_16 = arith.constant 0 : index
    %17 = vector.load %arg1[%c7, %c0_15, %c0_16] : memref<32x8x128xf32, #tpu.memory_space<vmem>>, vector<1x8x128xf32>
    %18 = vector.shape_cast %17 : vector<1x8x128xf32> to vector<8x128xf32>
    %c8 = arith.constant 8 : index
    %c0_17 = arith.constant 0 : index
    %c0_18 = arith.constant 0 : index
    %19 = vector.load %arg1[%c8, %c0_17, %c0_18] : memref<32x8x128xf32, #tpu.memory_space<vmem>>, vector<1x8x128xf32>
    %20 = vector.shape_cast %19 : vector<1x8x128xf32> to vector<8x128xf32>
    %c9 = arith.constant 9 : index
    %c0_19 = arith.constant 0 : index
    %c0_20 = arith.constant 0 : index
    %21 = vector.load %arg1[%c9, %c0_19, %c0_20] : memref<32x8x128xf32, #tpu.memory_space<vmem>>, vector<1x8x128xf32>
    %22 = vector.shape_cast %21 : vector<1x8x128xf32> to vector<8x128xf32>
    %c0_21 = arith.constant 0 : index
    %c0_22 = arith.constant 0 : index
    %c0_23 = arith.constant 0 : index
    %23 = vector.load %arg2[%c0_21, %c0_22, %c0_23] : memref<32x8x128xf32, #tpu.memory_space<vmem>>, vector<1x8x128xf32>
    %24 = vector.shape_cast %23 : vector<1x8x128xf32> to vector<8x128xf32>
    %c1_24 = arith.constant 1 : index
    %c0_25 = arith.constant 0 : index
    %c0_26 = arith.constant 0 : index
    %25 = vector.load %arg2[%c1_24, %c0_25, %c0_26] : memref<32x8x128xf32, #tpu.memory_space<vmem>>, vector<1x8x128xf32>
    %26 = vector.shape_cast %25 : vector<1x8x128xf32> to vector<8x128xf32>
    %c2_27 = arith.constant 2 : index
    %c0_28 = arith.constant 0 : index
    %c0_29 = arith.constant 0 : index
    %27 = vector.load %arg2[%c2_27, %c0_28, %c0_29] : memref<32x8x128xf32, #tpu.memory_space<vmem>>, vector<1x8x128xf32>
    %28 = vector.shape_cast %27 : vector<1x8x128xf32> to vector<8x128xf32>
    %c3_30 = arith.constant 3 : index
    %c0_31 = arith.constant 0 : index
    %c0_32 = arith.constant 0 : index
    %29 = vector.load %arg2[%c3_30, %c0_31, %c0_32] : memref<32x8x128xf32, #tpu.memory_space<vmem>>, vector<1x8x128xf32>
    %30 = vector.shape_cast %29 : vector<1x8x128xf32> to vector<8x128xf32>
    %c4_33 = arith.constant 4 : index
    %c0_34 = arith.constant 0 : index
    %c0_35 = arith.constant 0 : index
    %31 = vector.load %arg2[%c4_33, %c0_34, %c0_35] : memref<32x8x128xf32, #tpu.memory_space<vmem>>, vector<1x8x128xf32>
    %32 = vector.shape_cast %31 : vector<1x8x128xf32> to vector<8x128xf32>
    %c5_36 = arith.constant 5 : index
    %c0_37 = arith.constant 0 : index
    %c0_38 = arith.constant 0 : index
    %33 = vector.load %arg2[%c5_36, %c0_37, %c0_38] : memref<32x8x128xf32, #tpu.memory_space<vmem>>, vector<1x8x128xf32>
    %34 = vector.shape_cast %33 : vector<1x8x128xf32> to vector<8x128xf32>
    %c6_39 = arith.constant 6 : index
    %c0_40 = arith.constant 0 : index
    %c0_41 = arith.constant 0 : index
    %35 = vector.load %arg2[%c6_39, %c0_40, %c0_41] : memref<32x8x128xf32, #tpu.memory_space<vmem>>, vector<1x8x128xf32>
    %36 = vector.shape_cast %35 : vector<1x8x128xf32> to vector<8x128xf32>
    %c7_42 = arith.constant 7 : index
    %c0_43 = arith.constant 0 : index
    %c0_44 = arith.constant 0 : index
    %37 = vector.load %arg2[%c7_42, %c0_43, %c0_44] : memref<32x8x128xf32, #tpu.memory_space<vmem>>, vector<1x8x128xf32>
    %38 = vector.shape_cast %37 : vector<1x8x128xf32> to vector<8x128xf32>
    %c8_45 = arith.constant 8 : index
    %c0_46 = arith.constant 0 : index
    %c0_47 = arith.constant 0 : index
    %39 = vector.load %arg2[%c8_45, %c0_46, %c0_47] : memref<32x8x128xf32, #tpu.memory_space<vmem>>, vector<1x8x128xf32>
    %40 = vector.shape_cast %39 : vector<1x8x128xf32> to vector<8x128xf32>
    %c9_48 = arith.constant 9 : index
    %c0_49 = arith.constant 0 : index
    %c0_50 = arith.constant 0 : index
    %41 = vector.load %arg2[%c9_48, %c0_49, %c0_50] : memref<32x8x128xf32, #tpu.memory_space<vmem>>, vector<1x8x128xf32>
    %42 = vector.shape_cast %41 : vector<1x8x128xf32> to vector<8x128xf32>
    %cst = arith.constant 0.142857149 : f32
    %43 = vector.broadcast %cst : f32 to vector<8x128xf32>
    %44 = arith.mulf %24, %43 : vector<8x128xf32>
    %cst_51 = arith.constant 0.142857149 : f32
    %45 = vector.broadcast %cst_51 : f32 to vector<8x128xf32>
    %46 = arith.mulf %26, %45 : vector<8x128xf32>
    %cst_52 = arith.constant 5.000000e-01 : f32
    %47 = vector.broadcast %cst_52 : f32 to vector<8x128xf32>
    %48 = arith.mulf %47, %28 : vector<8x128xf32>
    %49 = arith.subf %44, %48 : vector<8x128xf32>
    %cst_53 = arith.constant 5.000000e-01 : f32
    %50 = vector.broadcast %cst_53 : f32 to vector<8x128xf32>
    %51 = arith.mulf %50, %30 : vector<8x128xf32>
    %52 = arith.subf %46, %51 : vector<8x128xf32>
    %cst_54 = arith.constant 5.000000e-01 : f32
    %53 = vector.broadcast %cst_54 : f32 to vector<8x128xf32>
    %54 = arith.mulf %53, %28 : vector<8x128xf32>
    %55 = arith.addf %44, %54 : vector<8x128xf32>
    %cst_55 = arith.constant 5.000000e-01 : f32
    %56 = vector.broadcast %cst_55 : f32 to vector<8x128xf32>
    %57 = arith.mulf %56, %30 : vector<8x128xf32>
    %58 = arith.addf %46, %57 : vector<8x128xf32>
    %cst_56 = arith.constant 0.142857149 : f32
    %59 = vector.broadcast %cst_56 : f32 to vector<8x128xf32>
    %60 = arith.mulf %4, %59 : vector<8x128xf32>
    %cst_57 = arith.constant 0.142857149 : f32
    %61 = vector.broadcast %cst_57 : f32 to vector<8x128xf32>
    %62 = arith.mulf %6, %61 : vector<8x128xf32>
    %cst_58 = arith.constant 5.000000e-01 : f32
    %63 = vector.broadcast %cst_58 : f32 to vector<8x128xf32>
    %64 = arith.mulf %63, %8 : vector<8x128xf32>
    %65 = arith.subf %60, %64 : vector<8x128xf32>
    %cst_59 = arith.constant 5.000000e-01 : f32
    %66 = vector.broadcast %cst_59 : f32 to vector<8x128xf32>
    %67 = arith.mulf %66, %10 : vector<8x128xf32>
    %68 = arith.subf %62, %67 : vector<8x128xf32>
    %cst_60 = arith.constant 5.000000e-01 : f32
    %69 = vector.broadcast %cst_60 : f32 to vector<8x128xf32>
    %70 = arith.mulf %69, %8 : vector<8x128xf32>
    %71 = arith.addf %60, %70 : vector<8x128xf32>
    %cst_61 = arith.constant 5.000000e-01 : f32
    %72 = vector.broadcast %cst_61 : f32 to vector<8x128xf32>
    %73 = arith.mulf %72, %10 : vector<8x128xf32>
    %74 = arith.addf %62, %73 : vector<8x128xf32>
    %75 = arith.maximumf %65, %49 : vector<8x128xf32>
    %76 = arith.maximumf %68, %52 : vector<8x128xf32>
    %77 = arith.minimumf %71, %55 : vector<8x128xf32>
    %78 = arith.minimumf %74, %58 : vector<8x128xf32>
    %79 = arith.subf %77, %75 : vector<8x128xf32>
    %cst_62 = arith.constant 0.000000e+00 : f32
    %80 = vector.broadcast %cst_62 : f32 to vector<8x128xf32>
    %81 = arith.maximumf %79, %80 : vector<8x128xf32>
    %82 = arith.subf %78, %76 : vector<8x128xf32>
    %cst_63 = arith.constant 0.000000e+00 : f32
    %83 = vector.broadcast %cst_63 : f32 to vector<8x128xf32>
    %84 = arith.maximumf %82, %83 : vector<8x128xf32>
    %85 = arith.mulf %81, %84 : vector<8x128xf32>
    %86 = arith.subf %71, %65 : vector<8x128xf32>
    %87 = arith.subf %74, %68 : vector<8x128xf32>
    %88 = arith.mulf %86, %87 : vector<8x128xf32>
    %89 = arith.subf %55, %49 : vector<8x128xf32>
    %90 = arith.subf %58, %52 : vector<8x128xf32>
    %91 = arith.mulf %89, %90 : vector<8x128xf32>
    %92 = arith.addf %88, %91 : vector<8x128xf32>
    %93 = arith.subf %92, %85 : vector<8x128xf32>
    %cst_64 = arith.constant 0.000000e+00 : f32
    %94 = vector.broadcast %cst_64 : f32 to vector<8x128xf32>
    %95 = arith.cmpf ogt, %93, %94 : vector<8x128xf32>
    %96 = arith.divf %85, %93 : vector<8x128xf32>
    %cst_65 = arith.constant 0.000000e+00 : f32
    %97 = vector.broadcast %cst_65 : f32 to vector<8x128xf32>
    %98 = arith.select %95, %96, %97 : vector<8x128xi1>, vector<8x128xf32>
    %cst_66 = arith.constant 0.142857149 : f32
    %99 = vector.broadcast %cst_66 : f32 to vector<8x128xf32>
    %100 = arith.mulf %14, %99 : vector<8x128xf32>
    %cst_67 = arith.constant 0.142857149 : f32
    %101 = vector.broadcast %cst_67 : f32 to vector<8x128xf32>
    %102 = arith.mulf %16, %101 : vector<8x128xf32>
    %cst_68 = arith.constant 5.000000e-01 : f32
    %103 = vector.broadcast %cst_68 : f32 to vector<8x128xf32>
    %104 = arith.mulf %103, %18 : vector<8x128xf32>
    %105 = arith.subf %100, %104 : vector<8x128xf32>
    %cst_69 = arith.constant 5.000000e-01 : f32
    %106 = vector.broadcast %cst_69 : f32 to vector<8x128xf32>
    %107 = arith.mulf %106, %20 : vector<8x128xf32>
    %108 = arith.subf %102, %107 : vector<8x128xf32>
    %cst_70 = arith.constant 5.000000e-01 : f32
    %109 = vector.broadcast %cst_70 : f32 to vector<8x128xf32>
    %110 = arith.mulf %109, %18 : vector<8x128xf32>
    %111 = arith.addf %100, %110 : vector<8x128xf32>
    %cst_71 = arith.constant 5.000000e-01 : f32
    %112 = vector.broadcast %cst_71 : f32 to vector<8x128xf32>
    %113 = arith.mulf %112, %20 : vector<8x128xf32>
    %114 = arith.addf %102, %113 : vector<8x128xf32>
    %115 = arith.maximumf %105, %49 : vector<8x128xf32>
    %116 = arith.maximumf %108, %52 : vector<8x128xf32>
    %117 = arith.minimumf %111, %55 : vector<8x128xf32>
    %118 = arith.minimumf %114, %58 : vector<8x128xf32>
    %119 = arith.subf %117, %115 : vector<8x128xf32>
    %cst_72 = arith.constant 0.000000e+00 : f32
    %120 = vector.broadcast %cst_72 : f32 to vector<8x128xf32>
    %121 = arith.maximumf %119, %120 : vector<8x128xf32>
    %122 = arith.subf %118, %116 : vector<8x128xf32>
    %cst_73 = arith.constant 0.000000e+00 : f32
    %123 = vector.broadcast %cst_73 : f32 to vector<8x128xf32>
    %124 = arith.maximumf %122, %123 : vector<8x128xf32>
    %125 = arith.mulf %121, %124 : vector<8x128xf32>
    %126 = arith.subf %111, %105 : vector<8x128xf32>
    %127 = arith.subf %114, %108 : vector<8x128xf32>
    %128 = arith.mulf %126, %127 : vector<8x128xf32>
    %129 = arith.subf %55, %49 : vector<8x128xf32>
    %130 = arith.subf %58, %52 : vector<8x128xf32>
    %131 = arith.mulf %129, %130 : vector<8x128xf32>
    %132 = arith.addf %128, %131 : vector<8x128xf32>
    %133 = arith.subf %132, %125 : vector<8x128xf32>
    %cst_74 = arith.constant 0.000000e+00 : f32
    %134 = vector.broadcast %cst_74 : f32 to vector<8x128xf32>
    %135 = arith.cmpf ogt, %133, %134 : vector<8x128xf32>
    %136 = arith.divf %125, %133 : vector<8x128xf32>
    %cst_75 = arith.constant 0.000000e+00 : f32
    %137 = vector.broadcast %cst_75 : f32 to vector<8x128xf32>
    %138 = arith.select %135, %136, %137 : vector<8x128xi1>, vector<8x128xf32>
    %139 = arith.cmpf ogt, %138, %98 : vector<8x128xf32>
    %140 = arith.select %139, %138, %98 : vector<8x128xi1>, vector<8x128xf32>
    %141 = arith.select %139, %14, %4 : vector<8x128xi1>, vector<8x128xf32>
    %142 = arith.select %139, %16, %6 : vector<8x128xi1>, vector<8x128xf32>
    %143 = arith.select %139, %18, %8 : vector<8x128xi1>, vector<8x128xf32>
    %144 = arith.select %139, %20, %10 : vector<8x128xi1>, vector<8x128xf32>
    %145 = arith.select %139, %22, %12 : vector<8x128xi1>, vector<8x128xf32>
    %146 = arith.select %139, %34, %24 : vector<8x128xi1>, vector<8x128xf32>
    %147 = arith.select %139, %36, %26 : vector<8x128xi1>, vector<8x128xf32>
    %148 = arith.select %139, %38, %28 : vector<8x128xi1>, vector<8x128xf32>
    %149 = arith.select %139, %40, %30 : vector<8x128xi1>, vector<8x128xf32>
    %cst_76 = arith.constant 1.000000e+00 : f32
    %150 = vector.broadcast %cst_76 : f32 to vector<8x128xf32>
    %151 = arith.cmpf oeq, %32, %150 : vector<8x128xf32>
    %cst_77 = arith.constant 0.000000e+00 : f32
    %152 = vector.broadcast %cst_77 : f32 to vector<8x128xf32>
    %153 = arith.cmpf oeq, %32, %152 : vector<8x128xf32>
    %cst_78 = arith.constant 0.000000e+00 : f32
    %154 = vector.broadcast %cst_78 : f32 to vector<8x128xf32>
    %155 = arith.subf %146, %141 : vector<8x128xf32>
    %156 = arith.mulf %155, %155 : vector<8x128xf32>
    %157 = arith.subf %147, %142 : vector<8x128xf32>
    %158 = arith.mulf %157, %157 : vector<8x128xf32>
    %159 = arith.addf %156, %158 : vector<8x128xf32>
    %160 = arith.select %151, %159, %154 : vector<8x128xi1>, vector<8x128xf32>
    %161 = arith.addf %148, %143 : vector<8x128xf32>
    %162 = arith.mulf %148, %143 : vector<8x128xf32>
    %163 = math.sqrt %162 : vector<8x128xf32>
    %cst_79 = arith.constant 2.000000e+00 : f32
    %164 = vector.broadcast %cst_79 : f32 to vector<8x128xf32>
    %165 = arith.mulf %164, %163 : vector<8x128xf32>
    %166 = arith.subf %161, %165 : vector<8x128xf32>
    %167 = arith.addf %149, %144 : vector<8x128xf32>
    %168 = arith.mulf %149, %144 : vector<8x128xf32>
    %169 = math.sqrt %168 : vector<8x128xf32>
    %cst_80 = arith.constant 2.000000e+00 : f32
    %170 = vector.broadcast %cst_80 : f32 to vector<8x128xf32>
    %171 = arith.mulf %170, %169 : vector<8x128xf32>
    %172 = arith.subf %167, %171 : vector<8x128xf32>
    %173 = arith.addf %166, %172 : vector<8x128xf32>
    %174 = arith.select %151, %173, %154 : vector<8x128xi1>, vector<8x128xf32>
    %175 = arith.subf %140, %145 : vector<8x128xf32>
    %176 = arith.mulf %175, %175 : vector<8x128xf32>
    %177 = arith.select %151, %176, %154 : vector<8x128xi1>, vector<8x128xf32>
    %178 = arith.subf %32, %12 : vector<8x128xf32>
    %179 = arith.mulf %178, %178 : vector<8x128xf32>
    %180 = arith.subf %42, %22 : vector<8x128xf32>
    %181 = arith.mulf %180, %180 : vector<8x128xf32>
    %182 = arith.addf %179, %181 : vector<8x128xf32>
    %183 = arith.select %153, %182, %154 : vector<8x128xi1>, vector<8x128xf32>
    %c10 = arith.constant 10 : index
    %c0_81 = arith.constant 0 : index
    %c0_82 = arith.constant 0 : index
    %184 = vector.load %arg2[%c10, %c0_81, %c0_82] : memref<32x8x128xf32, #tpu.memory_space<vmem>>, vector<1x8x128xf32>
    %185 = vector.shape_cast %184 : vector<1x8x128xf32> to vector<8x128xf32>
    %c10_83 = arith.constant 10 : index
    %c0_84 = arith.constant 0 : index
    %c0_85 = arith.constant 0 : index
    %186 = vector.load %arg1[%c10_83, %c0_84, %c0_85] : memref<32x8x128xf32, #tpu.memory_space<vmem>>, vector<1x8x128xf32>
    %187 = vector.shape_cast %186 : vector<1x8x128xf32> to vector<8x128xf32>
    %188 = arith.subf %185, %187 : vector<8x128xf32>
    %189 = arith.mulf %188, %188 : vector<8x128xf32>
    %190 = arith.addf %154, %189 : vector<8x128xf32>
    %c11 = arith.constant 11 : index
    %c0_86 = arith.constant 0 : index
    %c0_87 = arith.constant 0 : index
    %191 = vector.load %arg2[%c11, %c0_86, %c0_87] : memref<32x8x128xf32, #tpu.memory_space<vmem>>, vector<1x8x128xf32>
    %192 = vector.shape_cast %191 : vector<1x8x128xf32> to vector<8x128xf32>
    %c11_88 = arith.constant 11 : index
    %c0_89 = arith.constant 0 : index
    %c0_90 = arith.constant 0 : index
    %193 = vector.load %arg1[%c11_88, %c0_89, %c0_90] : memref<32x8x128xf32, #tpu.memory_space<vmem>>, vector<1x8x128xf32>
    %194 = vector.shape_cast %193 : vector<1x8x128xf32> to vector<8x128xf32>
    %195 = arith.subf %192, %194 : vector<8x128xf32>
    %196 = arith.mulf %195, %195 : vector<8x128xf32>
    %197 = arith.addf %190, %196 : vector<8x128xf32>
    %c12 = arith.constant 12 : index
    %c0_91 = arith.constant 0 : index
    %c0_92 = arith.constant 0 : index
    %198 = vector.load %arg2[%c12, %c0_91, %c0_92] : memref<32x8x128xf32, #tpu.memory_space<vmem>>, vector<1x8x128xf32>
    %199 = vector.shape_cast %198 : vector<1x8x128xf32> to vector<8x128xf32>
    %c12_93 = arith.constant 12 : index
    %c0_94 = arith.constant 0 : index
    %c0_95 = arith.constant 0 : index
    %200 = vector.load %arg1[%c12_93, %c0_94, %c0_95] : memref<32x8x128xf32, #tpu.memory_space<vmem>>, vector<1x8x128xf32>
    %201 = vector.shape_cast %200 : vector<1x8x128xf32> to vector<8x128xf32>
    %202 = arith.subf %199, %201 : vector<8x128xf32>
    %203 = arith.mulf %202, %202 : vector<8x128xf32>
    %204 = arith.addf %197, %203 : vector<8x128xf32>
    %c13 = arith.constant 13 : index
    %c0_96 = arith.constant 0 : index
    %c0_97 = arith.constant 0 : index
    %205 = vector.load %arg2[%c13, %c0_96, %c0_97] : memref<32x8x128xf32, #tpu.memory_space<vmem>>, vector<1x8x128xf32>
    %206 = vector.shape_cast %205 : vector<1x8x128xf32> to vector<8x128xf32>
    %c13_98 = arith.constant 13 : index
    %c0_99 = arith.constant 0 : index
    %c0_100 = arith.constant 0 : index
    %207 = vector.load %arg1[%c13_98, %c0_99, %c0_100] : memref<32x8x128xf32, #tpu.memory_space<vmem>>, vector<1x8x128xf32>
    %208 = vector.shape_cast %207 : vector<1x8x128xf32> to vector<8x128xf32>
    %209 = arith.subf %206, %208 : vector<8x128xf32>
    %210 = arith.mulf %209, %209 : vector<8x128xf32>
    %211 = arith.addf %204, %210 : vector<8x128xf32>
    %c14 = arith.constant 14 : index
    %c0_101 = arith.constant 0 : index
    %c0_102 = arith.constant 0 : index
    %212 = vector.load %arg2[%c14, %c0_101, %c0_102] : memref<32x8x128xf32, #tpu.memory_space<vmem>>, vector<1x8x128xf32>
    %213 = vector.shape_cast %212 : vector<1x8x128xf32> to vector<8x128xf32>
    %c14_103 = arith.constant 14 : index
    %c0_104 = arith.constant 0 : index
    %c0_105 = arith.constant 0 : index
    %214 = vector.load %arg1[%c14_103, %c0_104, %c0_105] : memref<32x8x128xf32, #tpu.memory_space<vmem>>, vector<1x8x128xf32>
    %215 = vector.shape_cast %214 : vector<1x8x128xf32> to vector<8x128xf32>
    %216 = arith.subf %213, %215 : vector<8x128xf32>
    %217 = arith.mulf %216, %216 : vector<8x128xf32>
    %218 = arith.addf %211, %217 : vector<8x128xf32>
    %c15 = arith.constant 15 : index
    %c0_106 = arith.constant 0 : index
    %c0_107 = arith.constant 0 : index
    %219 = vector.load %arg2[%c15, %c0_106, %c0_107] : memref<32x8x128xf32, #tpu.memory_space<vmem>>, vector<1x8x128xf32>
    %220 = vector.shape_cast %219 : vector<1x8x128xf32> to vector<8x128xf32>
    %c15_108 = arith.constant 15 : index
    %c0_109 = arith.constant 0 : index
    %c0_110 = arith.constant 0 : index
    %221 = vector.load %arg1[%c15_108, %c0_109, %c0_110] : memref<32x8x128xf32, #tpu.memory_space<vmem>>, vector<1x8x128xf32>
    %222 = vector.shape_cast %221 : vector<1x8x128xf32> to vector<8x128xf32>
    %223 = arith.subf %220, %222 : vector<8x128xf32>
    %224 = arith.mulf %223, %223 : vector<8x128xf32>
    %225 = arith.addf %218, %224 : vector<8x128xf32>
    %c16 = arith.constant 16 : index
    %c0_111 = arith.constant 0 : index
    %c0_112 = arith.constant 0 : index
    %226 = vector.load %arg2[%c16, %c0_111, %c0_112] : memref<32x8x128xf32, #tpu.memory_space<vmem>>, vector<1x8x128xf32>
    %227 = vector.shape_cast %226 : vector<1x8x128xf32> to vector<8x128xf32>
    %c16_113 = arith.constant 16 : index
    %c0_114 = arith.constant 0 : index
    %c0_115 = arith.constant 0 : index
    %228 = vector.load %arg1[%c16_113, %c0_114, %c0_115] : memref<32x8x128xf32, #tpu.memory_space<vmem>>, vector<1x8x128xf32>
    %229 = vector.shape_cast %228 : vector<1x8x128xf32> to vector<8x128xf32>
    %230 = arith.subf %227, %229 : vector<8x128xf32>
    %231 = arith.mulf %230, %230 : vector<8x128xf32>
    %232 = arith.addf %225, %231 : vector<8x128xf32>
    %c17 = arith.constant 17 : index
    %c0_116 = arith.constant 0 : index
    %c0_117 = arith.constant 0 : index
    %233 = vector.load %arg2[%c17, %c0_116, %c0_117] : memref<32x8x128xf32, #tpu.memory_space<vmem>>, vector<1x8x128xf32>
    %234 = vector.shape_cast %233 : vector<1x8x128xf32> to vector<8x128xf32>
    %c17_118 = arith.constant 17 : index
    %c0_119 = arith.constant 0 : index
    %c0_120 = arith.constant 0 : index
    %235 = vector.load %arg1[%c17_118, %c0_119, %c0_120] : memref<32x8x128xf32, #tpu.memory_space<vmem>>, vector<1x8x128xf32>
    %236 = vector.shape_cast %235 : vector<1x8x128xf32> to vector<8x128xf32>
    %237 = arith.subf %234, %236 : vector<8x128xf32>
    %238 = arith.mulf %237, %237 : vector<8x128xf32>
    %239 = arith.addf %232, %238 : vector<8x128xf32>
    %c18 = arith.constant 18 : index
    %c0_121 = arith.constant 0 : index
    %c0_122 = arith.constant 0 : index
    %240 = vector.load %arg2[%c18, %c0_121, %c0_122] : memref<32x8x128xf32, #tpu.memory_space<vmem>>, vector<1x8x128xf32>
    %241 = vector.shape_cast %240 : vector<1x8x128xf32> to vector<8x128xf32>
    %c18_123 = arith.constant 18 : index
    %c0_124 = arith.constant 0 : index
    %c0_125 = arith.constant 0 : index
    %242 = vector.load %arg1[%c18_123, %c0_124, %c0_125] : memref<32x8x128xf32, #tpu.memory_space<vmem>>, vector<1x8x128xf32>
    %243 = vector.shape_cast %242 : vector<1x8x128xf32> to vector<8x128xf32>
    %244 = arith.subf %241, %243 : vector<8x128xf32>
    %245 = arith.mulf %244, %244 : vector<8x128xf32>
    %246 = arith.addf %239, %245 : vector<8x128xf32>
    %c19 = arith.constant 19 : index
    %c0_126 = arith.constant 0 : index
    %c0_127 = arith.constant 0 : index
    %247 = vector.load %arg2[%c19, %c0_126, %c0_127] : memref<32x8x128xf32, #tpu.memory_space<vmem>>, vector<1x8x128xf32>
    %248 = vector.shape_cast %247 : vector<1x8x128xf32> to vector<8x128xf32>
    %c19_128 = arith.constant 19 : index
    %c0_129 = arith.constant 0 : index
    %c0_130 = arith.constant 0 : index
    %249 = vector.load %arg1[%c19_128, %c0_129, %c0_130] : memref<32x8x128xf32, #tpu.memory_space<vmem>>, vector<1x8x128xf32>
    %250 = vector.shape_cast %249 : vector<1x8x128xf32> to vector<8x128xf32>
    %251 = arith.subf %248, %250 : vector<8x128xf32>
    %252 = arith.mulf %251, %251 : vector<8x128xf32>
    %253 = arith.addf %246, %252 : vector<8x128xf32>
    %c20 = arith.constant 20 : index
    %c0_131 = arith.constant 0 : index
    %c0_132 = arith.constant 0 : index
    %254 = vector.load %arg2[%c20, %c0_131, %c0_132] : memref<32x8x128xf32, #tpu.memory_space<vmem>>, vector<1x8x128xf32>
    %255 = vector.shape_cast %254 : vector<1x8x128xf32> to vector<8x128xf32>
    %c20_133 = arith.constant 20 : index
    %c0_134 = arith.constant 0 : index
    %c0_135 = arith.constant 0 : index
    %256 = vector.load %arg1[%c20_133, %c0_134, %c0_135] : memref<32x8x128xf32, #tpu.memory_space<vmem>>, vector<1x8x128xf32>
    %257 = vector.shape_cast %256 : vector<1x8x128xf32> to vector<8x128xf32>
    %258 = arith.subf %255, %257 : vector<8x128xf32>
    %259 = arith.mulf %258, %258 : vector<8x128xf32>
    %260 = arith.addf %253, %259 : vector<8x128xf32>
    %c21 = arith.constant 21 : index
    %c0_136 = arith.constant 0 : index
    %c0_137 = arith.constant 0 : index
    %261 = vector.load %arg2[%c21, %c0_136, %c0_137] : memref<32x8x128xf32, #tpu.memory_space<vmem>>, vector<1x8x128xf32>
    %262 = vector.shape_cast %261 : vector<1x8x128xf32> to vector<8x128xf32>
    %c21_138 = arith.constant 21 : index
    %c0_139 = arith.constant 0 : index
    %c0_140 = arith.constant 0 : index
    %263 = vector.load %arg1[%c21_138, %c0_139, %c0_140] : memref<32x8x128xf32, #tpu.memory_space<vmem>>, vector<1x8x128xf32>
    %264 = vector.shape_cast %263 : vector<1x8x128xf32> to vector<8x128xf32>
    %265 = arith.subf %262, %264 : vector<8x128xf32>
    %266 = arith.mulf %265, %265 : vector<8x128xf32>
    %267 = arith.addf %260, %266 : vector<8x128xf32>
    %c22 = arith.constant 22 : index
    %c0_141 = arith.constant 0 : index
    %c0_142 = arith.constant 0 : index
    %268 = vector.load %arg2[%c22, %c0_141, %c0_142] : memref<32x8x128xf32, #tpu.memory_space<vmem>>, vector<1x8x128xf32>
    %269 = vector.shape_cast %268 : vector<1x8x128xf32> to vector<8x128xf32>
    %c22_143 = arith.constant 22 : index
    %c0_144 = arith.constant 0 : index
    %c0_145 = arith.constant 0 : index
    %270 = vector.load %arg1[%c22_143, %c0_144, %c0_145] : memref<32x8x128xf32, #tpu.memory_space<vmem>>, vector<1x8x128xf32>
    %271 = vector.shape_cast %270 : vector<1x8x128xf32> to vector<8x128xf32>
    %272 = arith.subf %269, %271 : vector<8x128xf32>
    %273 = arith.mulf %272, %272 : vector<8x128xf32>
    %274 = arith.addf %267, %273 : vector<8x128xf32>
    %c23 = arith.constant 23 : index
    %c0_146 = arith.constant 0 : index
    %c0_147 = arith.constant 0 : index
    %275 = vector.load %arg2[%c23, %c0_146, %c0_147] : memref<32x8x128xf32, #tpu.memory_space<vmem>>, vector<1x8x128xf32>
    %276 = vector.shape_cast %275 : vector<1x8x128xf32> to vector<8x128xf32>
    %c23_148 = arith.constant 23 : index
    %c0_149 = arith.constant 0 : index
    %c0_150 = arith.constant 0 : index
    %277 = vector.load %arg1[%c23_148, %c0_149, %c0_150] : memref<32x8x128xf32, #tpu.memory_space<vmem>>, vector<1x8x128xf32>
    %278 = vector.shape_cast %277 : vector<1x8x128xf32> to vector<8x128xf32>
    %279 = arith.subf %276, %278 : vector<8x128xf32>
    %280 = arith.mulf %279, %279 : vector<8x128xf32>
    %281 = arith.addf %274, %280 : vector<8x128xf32>
    %c24 = arith.constant 24 : index
    %c0_151 = arith.constant 0 : index
    %c0_152 = arith.constant 0 : index
    %282 = vector.load %arg2[%c24, %c0_151, %c0_152] : memref<32x8x128xf32, #tpu.memory_space<vmem>>, vector<1x8x128xf32>
    %283 = vector.shape_cast %282 : vector<1x8x128xf32> to vector<8x128xf32>
    %c24_153 = arith.constant 24 : index
    %c0_154 = arith.constant 0 : index
    %c0_155 = arith.constant 0 : index
    %284 = vector.load %arg1[%c24_153, %c0_154, %c0_155] : memref<32x8x128xf32, #tpu.memory_space<vmem>>, vector<1x8x128xf32>
    %285 = vector.shape_cast %284 : vector<1x8x128xf32> to vector<8x128xf32>
    %286 = arith.subf %283, %285 : vector<8x128xf32>
    %287 = arith.mulf %286, %286 : vector<8x128xf32>
    %288 = arith.addf %281, %287 : vector<8x128xf32>
    %c25 = arith.constant 25 : index
    %c0_156 = arith.constant 0 : index
    %c0_157 = arith.constant 0 : index
    %289 = vector.load %arg2[%c25, %c0_156, %c0_157] : memref<32x8x128xf32, #tpu.memory_space<vmem>>, vector<1x8x128xf32>
    %290 = vector.shape_cast %289 : vector<1x8x128xf32> to vector<8x128xf32>
    %c25_158 = arith.constant 25 : index
    %c0_159 = arith.constant 0 : index
    %c0_160 = arith.constant 0 : index
    %291 = vector.load %arg1[%c25_158, %c0_159, %c0_160] : memref<32x8x128xf32, #tpu.memory_space<vmem>>, vector<1x8x128xf32>
    %292 = vector.shape_cast %291 : vector<1x8x128xf32> to vector<8x128xf32>
    %293 = arith.subf %290, %292 : vector<8x128xf32>
    %294 = arith.mulf %293, %293 : vector<8x128xf32>
    %295 = arith.addf %288, %294 : vector<8x128xf32>
    %c26 = arith.constant 26 : index
    %c0_161 = arith.constant 0 : index
    %c0_162 = arith.constant 0 : index
    %296 = vector.load %arg2[%c26, %c0_161, %c0_162] : memref<32x8x128xf32, #tpu.memory_space<vmem>>, vector<1x8x128xf32>
    %297 = vector.shape_cast %296 : vector<1x8x128xf32> to vector<8x128xf32>
    %c26_163 = arith.constant 26 : index
    %c0_164 = arith.constant 0 : index
    %c0_165 = arith.constant 0 : index
    %298 = vector.load %arg1[%c26_163, %c0_164, %c0_165] : memref<32x8x128xf32, #tpu.memory_space<vmem>>, vector<1x8x128xf32>
    %299 = vector.shape_cast %298 : vector<1x8x128xf32> to vector<8x128xf32>
    %300 = arith.subf %297, %299 : vector<8x128xf32>
    %301 = arith.mulf %300, %300 : vector<8x128xf32>
    %302 = arith.addf %295, %301 : vector<8x128xf32>
    %c27 = arith.constant 27 : index
    %c0_166 = arith.constant 0 : index
    %c0_167 = arith.constant 0 : index
    %303 = vector.load %arg2[%c27, %c0_166, %c0_167] : memref<32x8x128xf32, #tpu.memory_space<vmem>>, vector<1x8x128xf32>
    %304 = vector.shape_cast %303 : vector<1x8x128xf32> to vector<8x128xf32>
    %c27_168 = arith.constant 27 : index
    %c0_169 = arith.constant 0 : index
    %c0_170 = arith.constant 0 : index
    %305 = vector.load %arg1[%c27_168, %c0_169, %c0_170] : memref<32x8x128xf32, #tpu.memory_space<vmem>>, vector<1x8x128xf32>
    %306 = vector.shape_cast %305 : vector<1x8x128xf32> to vector<8x128xf32>
    %307 = arith.subf %304, %306 : vector<8x128xf32>
    %308 = arith.mulf %307, %307 : vector<8x128xf32>
    %309 = arith.addf %302, %308 : vector<8x128xf32>
    %c28 = arith.constant 28 : index
    %c0_171 = arith.constant 0 : index
    %c0_172 = arith.constant 0 : index
    %310 = vector.load %arg2[%c28, %c0_171, %c0_172] : memref<32x8x128xf32, #tpu.memory_space<vmem>>, vector<1x8x128xf32>
    %311 = vector.shape_cast %310 : vector<1x8x128xf32> to vector<8x128xf32>
    %c28_173 = arith.constant 28 : index
    %c0_174 = arith.constant 0 : index
    %c0_175 = arith.constant 0 : index
    %312 = vector.load %arg1[%c28_173, %c0_174, %c0_175] : memref<32x8x128xf32, #tpu.memory_space<vmem>>, vector<1x8x128xf32>
    %313 = vector.shape_cast %312 : vector<1x8x128xf32> to vector<8x128xf32>
    %314 = arith.subf %311, %313 : vector<8x128xf32>
    %315 = arith.mulf %314, %314 : vector<8x128xf32>
    %316 = arith.addf %309, %315 : vector<8x128xf32>
    %c29 = arith.constant 29 : index
    %c0_176 = arith.constant 0 : index
    %c0_177 = arith.constant 0 : index
    %317 = vector.load %arg2[%c29, %c0_176, %c0_177] : memref<32x8x128xf32, #tpu.memory_space<vmem>>, vector<1x8x128xf32>
    %318 = vector.shape_cast %317 : vector<1x8x128xf32> to vector<8x128xf32>
    %c29_178 = arith.constant 29 : index
    %c0_179 = arith.constant 0 : index
    %c0_180 = arith.constant 0 : index
    %319 = vector.load %arg1[%c29_178, %c0_179, %c0_180] : memref<32x8x128xf32, #tpu.memory_space<vmem>>, vector<1x8x128xf32>
    %320 = vector.shape_cast %319 : vector<1x8x128xf32> to vector<8x128xf32>
    %321 = arith.subf %318, %320 : vector<8x128xf32>
    %322 = arith.mulf %321, %321 : vector<8x128xf32>
    %323 = arith.addf %316, %322 : vector<8x128xf32>
    %324 = arith.select %151, %323, %154 : vector<8x128xi1>, vector<8x128xf32>
    %c0_181 = arith.constant 0 : index
    %c0_182 = arith.constant 0 : index
    %c0_183 = arith.constant 0 : index
    %325 = vector.load %arg4[%c0_181, %c0_182, %c0_183] : memref<5x8x128xf32, #tpu.memory_space<vmem>>, vector<1x8x128xf32>
    %326 = vector.shape_cast %325 : vector<1x8x128xf32> to vector<8x128xf32>
    %327 = arith.addf %326, %160 : vector<8x128xf32>
    %c0_184 = arith.constant 0 : index
    %c0_185 = arith.constant 0 : index
    %c0_186 = arith.constant 0 : index
    %328 = vector.load %arg4[%c0_184, %c0_185, %c0_186] : memref<5x8x128xf32, #tpu.memory_space<vmem>>, vector<1x8x128xf32>
    %329 = vector.shape_cast %328 : vector<1x8x128xf32> to vector<8x128xf32>
    %330 = vector.shape_cast %327 : vector<8x128xf32> to vector<1x8x128xf32>
    tpu.vector_store %arg4[%c0_184, %c0_185, %c0_186], %330 {strides = array<i32>} : memref<5x8x128xf32, #tpu.memory_space<vmem>>, vector<1x8x128xf32>,
    %c1_187 = arith.constant 1 : index
    %c0_188 = arith.constant 0 : index
    %c0_189 = arith.constant 0 : index
    %331 = vector.load %arg4[%c1_187, %c0_188, %c0_189] : memref<5x8x128xf32, #tpu.memory_space<vmem>>, vector<1x8x128xf32>
    %332 = vector.shape_cast %331 : vector<1x8x128xf32> to vector<8x128xf32>
    %333 = arith.addf %332, %174 : vector<8x128xf32>
    %c1_190 = arith.constant 1 : index
    %c0_191 = arith.constant 0 : index
    %c0_192 = arith.constant 0 : index
    %334 = vector.load %arg4[%c1_190, %c0_191, %c0_192] : memref<5x8x128xf32, #tpu.memory_space<vmem>>, vector<1x8x128xf32>
    %335 = vector.shape_cast %334 : vector<1x8x128xf32> to vector<8x128xf32>
    %336 = vector.shape_cast %333 : vector<8x128xf32> to vector<1x8x128xf32>
    tpu.vector_store %arg4[%c1_190, %c0_191, %c0_192], %336 {strides = array<i32>} : memref<5x8x128xf32, #tpu.memory_space<vmem>>, vector<1x8x128xf32>,
    %c2_193 = arith.constant 2 : index
    %c0_194 = arith.constant 0 : index
    %c0_195 = arith.constant 0 : index
    %337 = vector.load %arg4[%c2_193, %c0_194, %c0_195] : memref<5x8x128xf32, #tpu.memory_space<vmem>>, vector<1x8x128xf32>
    %338 = vector.shape_cast %337 : vector<1x8x128xf32> to vector<8x128xf32>
    %339 = arith.addf %338, %177 : vector<8x128xf32>
    %c2_196 = arith.constant 2 : index
    %c0_197 = arith.constant 0 : index
    %c0_198 = arith.constant 0 : index
    %340 = vector.load %arg4[%c2_196, %c0_197, %c0_198] : memref<5x8x128xf32, #tpu.memory_space<vmem>>, vector<1x8x128xf32>
    %341 = vector.shape_cast %340 : vector<1x8x128xf32> to vector<8x128xf32>
    %342 = vector.shape_cast %339 : vector<8x128xf32> to vector<1x8x128xf32>
    tpu.vector_store %arg4[%c2_196, %c0_197, %c0_198], %342 {strides = array<i32>} : memref<5x8x128xf32, #tpu.memory_space<vmem>>, vector<1x8x128xf32>,
    %c3_199 = arith.constant 3 : index
    %c0_200 = arith.constant 0 : index
    %c0_201 = arith.constant 0 : index
    %343 = vector.load %arg4[%c3_199, %c0_200, %c0_201] : memref<5x8x128xf32, #tpu.memory_space<vmem>>, vector<1x8x128xf32>
    %344 = vector.shape_cast %343 : vector<1x8x128xf32> to vector<8x128xf32>
    %345 = arith.addf %344, %183 : vector<8x128xf32>
    %c3_202 = arith.constant 3 : index
    %c0_203 = arith.constant 0 : index
    %c0_204 = arith.constant 0 : index
    %346 = vector.load %arg4[%c3_202, %c0_203, %c0_204] : memref<5x8x128xf32, #tpu.memory_space<vmem>>, vector<1x8x128xf32>
    %347 = vector.shape_cast %346 : vector<1x8x128xf32> to vector<8x128xf32>
    %348 = vector.shape_cast %345 : vector<8x128xf32> to vector<1x8x128xf32>
    tpu.vector_store %arg4[%c3_202, %c0_203, %c0_204], %348 {strides = array<i32>} : memref<5x8x128xf32, #tpu.memory_space<vmem>>, vector<1x8x128xf32>,
    %c4_205 = arith.constant 4 : index
    %c0_206 = arith.constant 0 : index
    %c0_207 = arith.constant 0 : index
    %349 = vector.load %arg4[%c4_205, %c0_206, %c0_207] : memref<5x8x128xf32, #tpu.memory_space<vmem>>, vector<1x8x128xf32>
    %350 = vector.shape_cast %349 : vector<1x8x128xf32> to vector<8x128xf32>
    %351 = arith.addf %350, %324 : vector<8x128xf32>
    %c4_208 = arith.constant 4 : index
    %c0_209 = arith.constant 0 : index
    %c0_210 = arith.constant 0 : index
    %352 = vector.load %arg4[%c4_208, %c0_209, %c0_210] : memref<5x8x128xf32, #tpu.memory_space<vmem>>, vector<1x8x128xf32>
    %353 = vector.shape_cast %352 : vector<1x8x128xf32> to vector<8x128xf32>
    %354 = vector.shape_cast %351 : vector<8x128xf32> to vector<1x8x128xf32>
    tpu.vector_store %arg4[%c4_208, %c0_209, %c0_210], %354 {strides = array<i32>} : memref<5x8x128xf32, #tpu.memory_space<vmem>>, vector<1x8x128xf32>,
    %c0_i32_211 = arith.constant 0 : i32
    %355 = arith.cmpi eq, %arg0, %c0_i32_211 : i32
    %356 = arith.extui %355 : i1 to i32
    %c0_i32_212 = arith.constant 0 : i32
    %357 = arith.cmpi ne, %356, %c0_i32_212 : i32
    scf.if %357 {
      %c0_213 = arith.constant 0 : index
      %c0_214 = arith.constant 0 : index
      %c0_215 = arith.constant 0 : index
      %358 = vector.load %arg4[%c0_213, %c0_214, %c0_215] : memref<5x8x128xf32, #tpu.memory_space<vmem>>, vector<1x8x128xf32>
      %359 = vector.shape_cast %358 : vector<1x8x128xf32> to vector<8x128xf32>
      %360 = vector.shape_cast %359 : vector<8x128xf32> to vector<1x8x128xf32>
      %cst_216 = arith.constant dense<0.000000e+00> : vector<1xf32>
      %361 = vector.multi_reduction <add>, %360, %cst_216 [1, 2] : vector<1x8x128xf32> to vector<1xf32>
      %362 = vector.shape_cast %361 : vector<1xf32> to vector<1x1x1xf32>
      %363 = vector.extract %362[0, 0, 0] : f32 from vector<1x1x1xf32>
      %c0_217 = arith.constant 0 : index
      %364 = memref.load %arg3[%c0_217] : memref<5xf32, #tpu.memory_space<smem>>
      memref.store %363, %arg3[%c0_217] : memref<5xf32, #tpu.memory_space<smem>>
      %c1_218 = arith.constant 1 : index
      %c0_219 = arith.constant 0 : index
      %c0_220 = arith.constant 0 : index
      %365 = vector.load %arg4[%c1_218, %c0_219, %c0_220] : memref<5x8x128xf32, #tpu.memory_space<vmem>>, vector<1x8x128xf32>
      %366 = vector.shape_cast %365 : vector<1x8x128xf32> to vector<8x128xf32>
      %367 = vector.shape_cast %366 : vector<8x128xf32> to vector<1x8x128xf32>
      %cst_221 = arith.constant dense<0.000000e+00> : vector<1xf32>
      %368 = vector.multi_reduction <add>, %367, %cst_221 [1, 2] : vector<1x8x128xf32> to vector<1xf32>
      %369 = vector.shape_cast %368 : vector<1xf32> to vector<1x1x1xf32>
      %370 = vector.extract %369[0, 0, 0] : f32 from vector<1x1x1xf32>
      %c1_222 = arith.constant 1 : index
      %371 = memref.load %arg3[%c1_222] : memref<5xf32, #tpu.memory_space<smem>>
      memref.store %370, %arg3[%c1_222] : memref<5xf32, #tpu.memory_space<smem>>
      %c2_223 = arith.constant 2 : index
      %c0_224 = arith.constant 0 : index
      %c0_225 = arith.constant 0 : index
      %372 = vector.load %arg4[%c2_223, %c0_224, %c0_225] : memref<5x8x128xf32, #tpu.memory_space<vmem>>, vector<1x8x128xf32>
      %373 = vector.shape_cast %372 : vector<1x8x128xf32> to vector<8x128xf32>
      %374 = vector.shape_cast %373 : vector<8x128xf32> to vector<1x8x128xf32>
      %cst_226 = arith.constant dense<0.000000e+00> : vector<1xf32>
      %375 = vector.multi_reduction <add>, %374, %cst_226 [1, 2] : vector<1x8x128xf32> to vector<1xf32>
      %376 = vector.shape_cast %375 : vector<1xf32> to vector<1x1x1xf32>
      %377 = vector.extract %376[0, 0, 0] : f32 from vector<1x1x1xf32>
      %c2_227 = arith.constant 2 : index
      %378 = memref.load %arg3[%c2_227] : memref<5xf32, #tpu.memory_space<smem>>
      memref.store %377, %arg3[%c2_227] : memref<5xf32, #tpu.memory_space<smem>>
      %c3_228 = arith.constant 3 : index
      %c0_229 = arith.constant 0 : index
      %c0_230 = arith.constant 0 : index
      %379 = vector.load %arg4[%c3_228, %c0_229, %c0_230] : memref<5x8x128xf32, #tpu.memory_space<vmem>>, vector<1x8x128xf32>
      %380 = vector.shape_cast %379 : vector<1x8x128xf32> to vector<8x128xf32>
      %381 = vector.shape_cast %380 : vector<8x128xf32> to vector<1x8x128xf32>
      %cst_231 = arith.constant dense<0.000000e+00> : vector<1xf32>
      %382 = vector.multi_reduction <add>, %381, %cst_231 [1, 2] : vector<1x8x128xf32> to vector<1xf32>
      %383 = vector.shape_cast %382 : vector<1xf32> to vector<1x1x1xf32>
      %384 = vector.extract %383[0, 0, 0] : f32 from vector<1x1x1xf32>
      %c3_232 = arith.constant 3 : index
      %385 = memref.load %arg3[%c3_232] : memref<5xf32, #tpu.memory_space<smem>>
      memref.store %384, %arg3[%c3_232] : memref<5xf32, #tpu.memory_space<smem>>
      %c4_233 = arith.constant 4 : index
      %c0_234 = arith.constant 0 : index
      %c0_235 = arith.constant 0 : index
      %386 = vector.load %arg4[%c4_233, %c0_234, %c0_235] : memref<5x8x128xf32, #tpu.memory_space<vmem>>, vector<1x8x128xf32>
      %387 = vector.shape_cast %386 : vector<1x8x128xf32> to vector<8x128xf32>
      %388 = vector.shape_cast %387 : vector<8x128xf32> to vector<1x8x128xf32>
      %cst_236 = arith.constant dense<0.000000e+00> : vector<1xf32>
      %389 = vector.multi_reduction <add>, %388, %cst_236 [1, 2] : vector<1x8x128xf32> to vector<1xf32>
      %390 = vector.shape_cast %389 : vector<1xf32> to vector<1x1x1xf32>
      %391 = vector.extract %390[0, 0, 0] : f32 from vector<1x1x1xf32>
      %c4_237 = arith.constant 4 : index
      %392 = memref.load %arg3[%c4_237] : memref<5xf32, #tpu.memory_space<smem>>
      memref.store %391, %arg3[%c4_237] : memref<5xf32, #tpu.memory_space<smem>>
    } else {
    }
    return
  }
  func.func @transform_0(%arg0: i32) -> (i32, i32, i32) {
    %c0_i32 = arith.constant 0 : i32
    %c0_i32_0 = arith.constant 0 : i32
    %c0_i32_1 = arith.constant 0 : i32
    return %c0_i32, %arg0, %c0_i32_0 : i32, i32, i32
  }
  func.func @transform_1(%arg0: i32) -> (i32, i32, i32) {
    %c0_i32 = arith.constant 0 : i32
    %c0_i32_0 = arith.constant 0 : i32
    %c0_i32_1 = arith.constant 0 : i32
    return %c0_i32, %arg0, %c0_i32_0 : i32, i32, i32
  }
  func.func @transform_2(%arg0: i32) -> i32 {
    %c0_i32 = arith.constant 0 : i32
    %c0_i32_0 = arith.constant 0 : i32
    return %c0_i32 : i32
  }
}

</mosaic_0001>

<bundles_post_ra>
// kernel: yolo_loss_pallas.1
= control target key start
LH: loop header
LB: loop body
LE: loop exit
PB: predicated region body
PF: predicated region fallthrough
CT: control target
= control target key end

     0   :  { %s795_s0 = inlined_call_operand.vmem [shape: f32[32,8,128], index: 0, kind: input, shape index: {}]   ;;  %s796_s1 = inlined_call_operand.vmem [shape: f32[32,8,128], index: 1, kind: input, shape index: {}]   ;;  %s797_s2 = inlined_call_operand.vmem [shape: f32[5], index: 2, kind: output, shape index: {}]  }
   0x1   :  { %v522_v0 = vld [vmem:[%s795_s0] sm:$0xff]  ;;  %v527_v1 = vld [vmem:[%s795_s0 + $0x8] sm:$0xff]  ;;  %v532_v2 = vld [vmem:[%s795_s0 + $0x10] sm:$0xff] }
   0x2   :  { %v537_v3 = vld [vmem:[%s795_s0 + $0x18] sm:$0xff]  ;;  %v542_v4 = vld [vmem:[%s795_s0 + $0x28] sm:$0xff]  ;;  %v547_v5 = vld [vmem:[%s795_s0 + $0x30] sm:$0xff]  ;;  %v67_v6 = vmul.f32 0.14285715, %v522_v0  ;;  %v69_v7 = vmul.f32 0.5, %v532_v2 }
   0x3   :  { %v554_v8 = vld [vmem:[%s795_s0 + $0x38] sm:$0xff]  ;;  %v559_v9 = vld [vmem:[%s795_s0 + $0x40] sm:$0xff]  ;;  %v68_v11 = vmul.f32 0.14285715, %v527_v1  ;;  %v71_v12 = vmul.f32 0.5, %v537_v3  ;;  %v571_v13 = vld [vmem:[%s796_s1 + $0x8] sm:$0xff] }
   0x4   :  { %v564_v10 = vld [vmem:[%s796_s1] sm:$0xff]  ;;  %v576_v14 = vld [vmem:[%s796_s1 + $0x10] sm:$0xff]  ;;  %v581_v15 = vld [vmem:[%s796_s1 + $0x18] sm:$0xff]  ;;  %v70_v17 = vsub.f32 %v67_v6, %v69_v7  ;;  %v73_v18 = vadd.f32 %v69_v7, %v67_v6  ;;  %v98_v19 = vmul.f32 0.5, %v554_v8  ;;  %v60_v20 = vmul.f32 0.14285715, %v571_v13 }
   0x5   :  { %v59_v16 = vmul.f32 0.14285715, %v564_v10  ;;  %v61_v21 = vmul.f32 0.5, %v576_v14  ;;  %v72_v22 = vsub.f32 %v68_v11, %v71_v12  ;;  %v74_v23 = vadd.f32 %v71_v12, %v68_v11  ;;  %v430_v52 = vld [vmem:[%s796_s1 + $0x50] sm:$0xff]  ;;  %v432_v58 = vld [vmem:[%s796_s1 + $0x58] sm:$0xff]  ;;  %v434_v62 = vld [vmem:[%s796_s1 + $0x60] sm:$0xff] }
   0x6   :  { %v63_v24 = vmul.f32 0.5, %v581_v15  ;;  %v84_v25 = vsub.f32 %v73_v18, %v70_v17  ;;  %v96_v26 = vmul.f32 0.14285715, %v542_v4  ;;  %v97_v27 = vmul.f32 0.14285715, %v547_v5  ;;  %v431_v57 = vld [vmem:[%s795_s0 + $0x50] sm:$0xff] }
   0x7   :  { %v62_v28 = vsub.f32 %v59_v16, %v61_v21  ;;  %v65_v29 = vadd.f32 %v61_v21, %v59_v16  ;;  %v85_v30 = vsub.f32 %v74_v23, %v72_v22  ;;  %v100_v31 = vmul.f32 0.5, %v559_v9  ;;  %v433_v59 = vld [vmem:[%s795_s0 + $0x58] sm:$0xff]  ;;  %v435_v63 = vld [vmem:[%s795_s0 + $0x60] sm:$0xff]  ;;  %v436_v12 = vld [vmem:[%s796_s1 + $0x68] sm:$0xff] }
   0x8   :  { %v64_v32 = vsub.f32 %v60_v20, %v63_v24  ;;  %v66_v33 = vadd.f32 %v63_v24, %v60_v20  ;;  %v99_v34 = vsub.f32 %v96_v26, %v98_v19  ;;  %v102_v35 = vadd.f32 %v98_v19, %v96_v26  ;;  %v437_v19 = vld [vmem:[%s795_s0 + $0x68] sm:$0xff]  ;;  %v438_v20 = vld [vmem:[%s796_s1 + $0x70] sm:$0xff] }
   0x9   :  { %v75_v36 = vmax.f32 %v70_v17, %v62_v28  ;;  %v77_v37 = vmin.f32 %v73_v18, %v65_v29  ;;  %v86_v38 = vmul.f32 %v85_v30, %v84_v25  ;;  %v87_v39 = vsub.f32 %v65_v29, %v62_v28  ;;  %v439_v21 = vld [vmem:[%s795_s0 + $0x70] sm:$0xff] }
   0xa   :  { %v76_v40 = vmax.f32 %v72_v22, %v64_v32  ;;  %v78_v41 = vmin.f32 %v74_v23, %v66_v33  ;;  %v88_v42 = vsub.f32 %v66_v33, %v64_v32  ;;  %v101_v43 = vsub.f32 %v97_v27, %v100_v31 }
   0xb   :  { %v79_v44 = vsub.f32 %v77_v37, %v75_v36  ;;  %v103_v45 = vadd.f32 %v100_v31, %v97_v27  ;;  %v104_v46 = vmax.f32 %v99_v34, %v62_v28  ;;  %v106_v47 = vmin.f32 %v102_v35, %v65_v29  ;;  %v440_v28 = vld [vmem:[%s796_s1 + $0x78] sm:$0xff] }
   0xc   :  { %v81_v48 = vsub.f32 %v78_v41, %v76_v40  ;;  %v89_v49 = vmul.f32 %v88_v42, %v87_v39  ;;  %v105_v50 = vmax.f32 %v101_v43, %v64_v32  ;;  %v113_v51 = vsub.f32 %v102_v35, %v99_v34  ;;  %v441_v29 = vld [vmem:[%s795_s0 + $0x78] sm:$0xff]  ;;  %v442_v34 = vld [vmem:[%s796_s1 + $0x80] sm:$0xff]  ;;  %v444_v40 = vld [vmem:[%s796_s1 + $0x88] sm:$0xff] }
   0xd   :  { %v80_v53 = vmax.f32 %v79_v44, 0.0  ;;  %v107_v54 = vmin.f32 %v103_v45, %v66_v33  ;;  %v108_v55 = vsub.f32 %v106_v47, %v104_v46  ;;  %v114_v56 = vsub.f32 %v103_v45, %v101_v43  ;;  %v443_v35 = vld [vmem:[%s795_s0 + $0x80] sm:$0xff]  ;;  %v445_v41 = vld [vmem:[%s795_s0 + $0x88] sm:$0xff] }
   0xe   :  { %v82_v60 = vmax.f32 %v81_v48, 0.0  ;;  %v90_v61 = vadd.f32 %v89_v49, %v86_v38  ;;  %v178_v17 = vsub.f32 %v430_v52, %v431_v57  ;;  %v185_v18 = vsub.f32 %v432_v58, %v433_v59 }
   0xf   :  { %v109_v6 = vmax.f32 %v108_v55, 0.0  ;;  %v110_v7 = vsub.f32 %v107_v54, %v105_v50  ;;  %v115_v11 = vmul.f32 %v114_v56, %v113_v51  ;;  %v192_v24 = vsub.f32 %v434_v62, %v435_v63 }
  0x10   :  { %v83_v16 = vmul.f32 %v82_v60, %v80_v53  ;;  %v179_v26 = vmul.f32 %v178_v17, %v178_v17  ;;  %v186_v27 = vmul.f32 %v185_v18, %v185_v18  ;;  %v199_v32 = vsub.f32 %v436_v12, %v437_v19 }
  0x11   :  { %v111_v22 = vmax.f32 %v110_v7, 0.0  ;;  %v116_v23 = vadd.f32 %v115_v11, %v89_v49  ;;  %v193_v31 = vmul.f32 %v192_v24, %v192_v24  ;;  %v206_v33 = vsub.f32 %v438_v20, %v439_v21 }
  0x12   :  { %v91_v25 = vsub.f32 %v90_v61, %v83_v16  ;;  %v187_v36 = vadd.f32 %v186_v27, %v179_v26  ;;  %v200_v38 = vmul.f32 %v199_v32, %v199_v32  ;;  %v213_v39 = vsub.f32 %v440_v28, %v441_v29 }
  0x13   :  { %v112_v30 = vmul.f32 %v111_v22, %v109_v6 }
  0x14   :  { %481 = vrcp.f32 %v91_v25 }
  0x15   :  { %v117_v37 = vsub.f32 %v116_v23, %v112_v30 }
  0x16   :  { %7 = vsyncpa [#allocation4], 0  ;;  %v194_v42 = vadd.f32 %v193_v31, %v187_v36  ;;  %v207_v43 = vmul.f32 %v206_v33, %v206_v33  ;;  %v220_v44 = vsub.f32 %v442_v34, %v443_v35  ;;  %v446_v45 = vld [vmem:[%s796_s1 + $0x90] sm:$0xff]  ;;  %v214_v48 = vmul.f32 %v213_v39, %v213_v39  ;;  %v429_v50 = vld [vmem:[%s796_s1 + $0x48] sm:$0xff]  ;;  %s403_s18 = sshll.u32 %s797_s2, 4  ;;  %s404_s18 = int_to_ptr.vmem [resolvable:$true] %s403_s18 }
  0x17   :  { %483 = vrcp.f32 %v117_v37  ;;  %v447_v46 = vld [vmem:[%s795_s0 + $0x90] sm:$0xff]  ;;  %v227_v49 = vsub.f32 %v444_v40, %v445_v41  ;;  %v448_v54 = vld [vmem:[%s796_s1 + $0x98] sm:$0xff]  ;;  %v657_v56 = vld [vmem:[%s796_s1 + $0x20] sm:$0xff]  ;;  %vm92_vm0 = vcmp.gt.f32.partialorder %v91_v25, 0.0  ;;  %vm118_vm1 = vcmp.gt.f32.partialorder %v117_v37, 0.0  ;;  %s489_s23 = scalar_lea.vmem %s404_s18, 16  ;;  %p494_p1 = scmp.lt.s32.totalorder %s404_s18, %s404_s18 }
  0x18   :  { %v201_v47 = vadd.f32 %v200_v38, %v194_v42  ;;  %v221_v52 = vmul.f32 %v220_v44, %v220_v44  ;;  %v234_v53 = vsub.f32 %v446_v45, %v447_v46  ;;  %v449_v55 = vld [vmem:[%s795_s0 + $0x98] sm:$0xff]  ;;  %v415_v57 = vld [vmem:[%s795_s0 + $0x20] sm:$0xff]  ;;  %v420_v58 = vld [vmem:[%s795_s0 + $0x48] sm:$0xff]  ;;  %vm133_vm2 = vcmp.eq.f32.partialorder %v657_v56, 1.0  ;;  %p490_p0 = scmp.ne.s32.totalorder %s404_s18, %s489_s23  ;;  %p495_p2 = scmp.lt.s32.totalorder %s489_s23, %s489_s23 }
  0x19   :  { %v168_v59 = vsub.f32 %v657_v56, %v415_v57  ;;  %v170_v60 = vsub.f32 %v429_v50, %v420_v58  ;;  %v228_v62 = vmul.f32 %v227_v49, %v227_v49  ;;  %v241_v63 = vsub.f32 %v448_v54, %v449_v55  ;;  %v450_v12 = vld [vmem:[%s796_s1 + $0xa0] sm:$0xff]  ;;  %v452_v26 = vld [vmem:[%s796_s1 + $0xa8] sm:$0xff]  ;;  %v455_v25 = vld [vmem:[%s795_s0 + $0xb0] sm:$0xff] }
  0x1a   :  { %v208_v51 = vadd.f32 %v207_v43, %v201_v47  ;;  %v235_v11 = vmul.f32 %v234_v53, %v234_v53  ;;  %v451_v17 = vld [vmem:[%s795_s0 + $0xa0] sm:$0xff]  ;;  %v453_v27 = vld [vmem:[%s795_s0 + $0xa8] sm:$0xff]  ;;  %v426_v33 = vld [vmem:[%s796_s1 + $0x30] sm:$0xff]  ;;  %vm134_vm4 = vcmp.eq.f32.partialorder %v657_v56, 0.0  ;;  %p496_p3 = por %p495_p2, %p494_p1 }
  0x1b   :  { %v169_v19 = vmul.f32 %v168_v59, %v168_v59  ;;  %v171_v20 = vmul.f32 %v170_v60, %v170_v60  ;;  %v242_v23 = vmul.f32 %v241_v63, %v241_v63  ;;  %v248_v24 = vsub.f32 %v450_v12, %v451_v17  ;;  %v425_v32 = vld [vmem:[%s796_s1 + $0x28] sm:$0xff]  ;;  %v427_v37 = vld [vmem:[%s796_s1 + $0x38] sm:$0xff]  ;;  %v428_v45 = vld [vmem:[%s796_s1 + $0x40] sm:$0xff] }
  0x1c   :  { %v215_v61 = vadd.f32 %v214_v48, %v208_v51  ;;  %v255_v35 = vsub.f32 %v452_v26, %v453_v27  ;;  %v462_v63 = vld [vmem:[%s796_s1 + $0xd0] sm:$0xff]  ;;  %p497_p4 = pnand %p496_p3, %p490_p0 }
  0x1d   :  { %v249_v39 = vmul.f32 %v248_v24, %v248_v24  ;;  %v467_v24 = vld [vmem:[%s795_s0 + $0xe0] sm:$0xff] }
  0x1e   :  { %v482_v6 = vpop.eup %481  ;;  %v222_v7 = vadd.f32 %v221_v52, %v215_v61  ;;  %v256_v54 = vmul.f32 %v255_v35, %v255_v35 }
  0x1f   :  { %v94_v18 = vmul.f32 %v482_v6, %v83_v16  ;;  %v454_v16 = vld [vmem:[%s796_s1 + $0xb0] sm:$0xff] }
  0x20   :  { %v229_v21 = vadd.f32 %v228_v62, %v222_v7  ;;  %v262_v40 = vsub.f32 %v454_v16, %v455_v25  ;;  %v463_v6 = vld [vmem:[%s795_s0 + $0xd0] sm:$0xff] }
  0x21   :  { %v484_v22 = vpop.eup %483  ;;  %v95_v28 = vsel %vm92_vm0, %v94_v18, 0.0  ;;  %v464_v18 = vld [vmem:[%s796_s1 + $0xd8] sm:$0xff] }
  0x22   :  { %v120_v29 = vmul.f32 %v484_v22, %v112_v30  ;;  %v236_v31 = vadd.f32 %v235_v11, %v229_v21  ;;  %v172_v30 = vadd.f32 %v171_v20, %v169_v19  ;;  %v263_v60 = vmul.f32 %v262_v40, %v262_v40  ;;  %v465_v19 = vld [vmem:[%s795_s0 + $0xd8] sm:$0xff] }
  0x23   :  { %v290_v22 = vsub.f32 %v462_v63, %v463_v6 }
  0x24   :  { %v121_v34 = vsel %vm118_vm1, %v120_v29, 0.0  ;;  %v243_v38 = vadd.f32 %v242_v23, %v236_v31  ;;  %v173_v7 = vsel %vm134_vm4, %v172_v30, 0.0  ;;  %v466_v23 = vld [vmem:[%s796_s1 + $0xe0] sm:$0xff]  ;;  %v468_v29 = vld [vmem:[%s796_s1 + $0xe8] sm:$0xff] }
  0x25   :  { %vm691_vm3 = vcmp.gt.f32.partialorder %v121_v34, %v95_v28  ;;  %v469_v31 = vld [vmem:[%s795_s0 + $0xe8] sm:$0xff]  ;;  %v291_v25 = vmul.f32 %v290_v22, %v290_v22 }
  0x26   :  { %v124_v41 = vsel %vm691_vm3, %v542_v4, %v522_v0  ;;  %v125_v42 = vsel %vm691_vm3, %v547_v5, %v527_v1  ;;  %v129_v43 = vsel %vm691_vm3, %v425_v32, %v564_v10  ;;  %v130_v44 = vsel %vm691_vm3, %v426_v33, %v571_v13  ;;  %v456_v0 = vld [vmem:[%s796_s1 + $0xb8] sm:$0xff] }
  0x27   :  { %v457_v1 = vld [vmem:[%s795_s0 + $0xb8] sm:$0xff]  ;;  %v135_v4 = vsub.f32 %v129_v43, %v124_v41  ;;  %v137_v5 = vsub.f32 %v130_v44, %v125_v42  ;;  %v123_v10 = vsel %vm691_vm3, %v121_v34, %v95_v28  ;;  %v128_v13 = vsel %vm691_vm3, %v420_v58, %v415_v57  ;;  %v461_v58 = vld [vmem:[%s795_s0 + $0xc8] sm:$0xff] }
  0x28   :  { %v165_v46 = vsub.f32 %v123_v10, %v128_v13  ;;  %v729_v47 = vsel %vm691_vm3, %v554_v8, %v532_v2  ;;  %v735_v48 = vsel %vm691_vm3, %v559_v9, %v537_v3  ;;  %v131_v49 = vsel %vm691_vm3, %v427_v37, %v576_v14  ;;  %v458_v2 = vld [vmem:[%s796_s1 + $0xc0] sm:$0xff] }
  0x29   :  { %v136_v50 = vmul.f32 %v135_v4, %v135_v4  ;;  %v138_v51 = vmul.f32 %v137_v5, %v137_v5  ;;  %v132_v52 = vsel %vm691_vm3, %v428_v45, %v581_v15  ;;  %v269_v53 = vsub.f32 %v456_v0, %v457_v1  ;;  %v459_v3 = vld [vmem:[%s795_s0 + $0xc0] sm:$0xff]  ;;  %v460_v15 = vld [vmem:[%s796_s1 + $0xc8] sm:$0xff] }
  0x2a   :  { %v166_v8 = vmul.f32 %v165_v46, %v165_v46  ;;  %v142_v9 = vmul.f32 %v131_v49, %v729_v47  ;;  %v153_v14 = vmul.f32 %v132_v52, %v735_v48  ;;  %v250_v57 = vadd.f32 %v249_v39, %v243_v38 }
  0x2b   :  { %v139_v55 = vadd.f32 %v138_v51, %v136_v50  ;;  %v276_v61 = vsub.f32 %v458_v2, %v459_v3  ;;  %v270_v12 = vmul.f32 %v269_v53, %v269_v53  ;;  %v283_v17 = vsub.f32 %v460_v15, %v461_v58 }
  0x2c   :  { %v167_v59 = vsel %vm133_vm2, %v166_v8, 0.0  ;;  %485 = vrsqrt.f32 %v142_v9  ;;  %v257_v11 = vadd.f32 %v256_v54, %v250_v57  ;;  %v297_v28 = vsub.f32 %v464_v18, %v465_v19 }
  0x2d   :  { %v140_v62 = vsel %vm133_vm2, %v139_v55, 0.0  ;;  %362 = vadd.xlane.f32.xlu1 %v167_v59  ;;  %487 = vrsqrt.f32 %v153_v14  ;;  %v277_v21 = vmul.f32 %v276_v61, %v276_v61  ;;  %v284_v27 = vmul.f32 %v283_v17, %v283_v17 }
  0x2e   :  { %338 = vadd.xlane.f32.xlu0 %v140_v62  ;;  %v264_v20 = vadd.f32 %v263_v60, %v257_v11  ;;  %v304_v32 = vsub.f32 %v466_v23, %v467_v24  ;;  %v311_v33 = vsub.f32 %v468_v29, %v469_v31  ;;  %vm145_vm5 = vcmp.eq.f32.partialorder %v142_v9, inf }
  0x2f   :  { %v148_v30 = vand.u32 2147483648, %v142_v9  ;;  %v298_v36 = vmul.f32 %v297_v28, %v297_v28  ;;  %vm147_vm6 = vcmp.eq.f32.partialorder %v142_v9, 0.0  ;;  %vm156_vm7 = vcmp.eq.f32.partialorder %v153_v14, inf }
  0x30   :  { %v271_v26 = vadd.f32 %v270_v12, %v264_v20  ;;  %v159_v39 = vand.u32 2147483648, %v153_v14  ;;  %vm158_vm8 = vcmp.eq.f32.partialorder %v153_v14, 0.0  ;;  %v305_v42 = vmul.f32 %v304_v32, %v304_v32 }
  0x31   :  { %374 = vadd.xlane.f32.xlu1 %v173_v7  ;;  %v141_v43 = vadd.f32 %v131_v49, %v729_v47  ;;  %v152_v0 = vadd.f32 %v132_v52, %v735_v48  ;;  %v312_v50 = vmul.f32 %v311_v33, %v311_v33 }
  0x32   :  { %v278_v16 = vadd.f32 %v277_v21, %v271_v26 }
  0x34   :  { %v285_v35 = vadd.f32 %v284_v27, %v278_v16 }
  0x36   :  { %v486_v34 = vpop.eup %485  ;;  %v292_v41 = vadd.f32 %v291_v25, %v285_v35 }
  0x37   :  { %v488_v37 = vpop.eup %487  ;;  %v144_v38 = vmul.f32 %v486_v34, %v142_v9 }
  0x38   :  { %v155_v40 = vmul.f32 %v488_v37, %v153_v14  ;;  %v299_v4 = vadd.f32 %v298_v36, %v292_v41 }
  0x39   :  { %v146_v44 = vsel %vm145_vm5, %v142_v9, %v144_v38 }
  0x3a   :  { %v149_v45 = vsel %vm147_vm6, %v148_v30, %v146_v44  ;;  %v157_v1 = vsel %vm156_vm7, %v153_v14, %v155_v40  ;;  %v306_v46 = vadd.f32 %v305_v42, %v299_v4 }
  0x3b   :  { %v150_v5 = vmul.f32 2.0, %v149_v45  ;;  %v160_v10 = vsel %vm158_vm8, %v159_v39, %v157_v1 }
  0x3c   :  { %v161_v13 = vmul.f32 2.0, %v160_v10  ;;  %v313_v3 = vadd.f32 %v312_v50, %v306_v46 }
  0x3d   :  { %v151_v51 = vsub.f32 %v141_v43, %v150_v5 }
  0x3e   :  { %v162_v53 = vsub.f32 %v152_v0, %v161_v13  ;;  %v314_v47 = vsel %vm133_vm2, %v313_v3, 0.0 }
  0x40   :  { %v163_v2 = vadd.f32 %v162_v53, %v151_v51 }
  0x42   :  { %v164_v8 = vsel %vm133_vm2, %v163_v2, 0.0 }
  0x43   :  { %350 = vadd.xlane.f32.xlu0 %v164_v8 }
  0x47   :  { %386 = vadd.xlane.f32.xlu0 %v314_v47 }
  0xba   :  { %v363_v14 = vpop.xlane.xlu1 %362 }
  0xbb   :  { %v339_v48 = vpop.xlane.xlu0 %338  ;;  %v364_v58 = vrot.slane %v363_v14, 4 }
  0xbc   :  { %v340_v49 = vrot.slane %v339_v48, 4 }
  0xbd   :  { %v365_v60 = vadd.f32 %v364_v58, %v363_v14 }
  0xbe   :  { %v341_v52 = vadd.f32 %v340_v49, %v339_v48  ;;  %v375_v57 = vpop.xlane.xlu1 %374 }
  0xbf   :  { %v376_v59 = vrot.slane %v375_v57, 4  ;;  %v366_v62 = vrot.slane %v365_v60, 2 }
  0xc0   :  { %v342_v9 = vrot.slane %v341_v52, 2 }
  0xc1   :  { %v377_v61 = vadd.f32 %v376_v59, %v375_v57  ;;  %v367_v12 = vadd.f32 %v366_v62, %v365_v60 }
  0xc2   :  { %v343_v54 = vadd.f32 %v342_v9, %v341_v52 }
  0xc3   :  { %v378_v6 = vrot.slane %v377_v61, 2  ;;  %v368_v22 = vrot.slane %v367_v12, 1 }
  0xc4   :  { %v344_v55 = vrot.slane %v343_v54, 1 }
  0xc5   :  { %v379_v17 = vadd.f32 %v378_v6, %v377_v61  ;;  %v369_v29 = vadd.f32 %v368_v22, %v367_v12 }
  0xc6   :  { %v345_v15 = vadd.f32 %v344_v55, %v343_v54 }
  0xc7   :  { %v380_v26 = vrot.slane %v379_v17, 1 }
  0xc8   :  { %470 = vpush %v345_v15 }
  0xc9   :  { %v381_v31 = vadd.f32 %v380_v26, %v379_v17 }
  0xd0   :  { %v351_v63 = vpop.xlane.xlu0 %350 }
  0xd1   :  { %v352_v56 = vrot.slane %v351_v63, 4 }
  0xd3   :  { %v353_v7 = vadd.f32 %v352_v56, %v351_v63 }
  0xd4   :  { %v387_v11 = vpop.xlane.xlu0 %386 }
  0xd5   :  { %v354_v18 = vrot.slane %v353_v7, 2  ;;  %v388_v19 = vrot.slane %v387_v11, 4 }
  0xd7   :  { %v389_v20 = vadd.f32 %v388_v19, %v387_v11  ;;  %v355_v21 = vadd.f32 %v354_v18, %v353_v7 }
  0xd9   :  { %v390_v23 = vrot.slane %v389_v20, 2  ;;  %v356_v24 = vrot.slane %v355_v21, 1 }
  0xdb   :  { %v391_v27 = vadd.f32 %v390_v23, %v389_v20  ;;  %v357_v28 = vadd.f32 %v356_v24, %v355_v21 }
  0xdd   :  { %472 = vpush %v357_v28  ;;  %v392_v16 = vrot.slane %v391_v27, 1 }
  0xde   :  { %474 = vpush %v369_v29 }
  0xdf   :  { %476 = vpush %v381_v31  ;;  %v393_v25 = vadd.f32 %v392_v16, %v391_v27 }
  0xe1   :  { %478 = vpush %v393_v25 }
  0xf9   :  { %s471_s0 = spop %470 }
  0xfa   :  { %348 = sst [smem:[#allocation3]] %s471_s0 }
 0x10e   :  { %s473_s19 = spop %472 }
 0x10f   :  { %360 = sst [smem:[#allocation3 + $0x1]] %s473_s19  ;;  %s475_s20 = spop %474 }
 0x110   :  { %372 = sst [smem:[#allocation3 + $0x2]] %s475_s20  ;;  %s477_s21 = spop %476 }
 0x111   :  { %384 = sst [smem:[#allocation3 + $0x3]] %s477_s21 }
 0x112   :  { %s479_s22 = spop %478 }
 0x113   :  { %396 = sst [smem:[#allocation3 + $0x4]] %s479_s22 }
 0x114   :  { %500 = shalt.err (!%p497_p4)
}
 0x115   :  { %s503_s24 = smov [#allocation3]  }
 0x116   :  { %406 = dma.smem_to_vmem %s503_s24, 16, %s404_s18, [#allocation4]  }
 0x117   :  { %501 = dma.done.wait [#allocation4], 16  }
 0x118   :  { %502 = vsyncadd [#allocation4], 4294967280 }
 0x119   :  { %410 = sfence }
 0x11a   :  { %411 = vsyncpa [#allocation4], 1 }

</bundles_post_ra>
